<compile_context>
chip_gen: v7x
topology: tpu7x:2x2x1
jax: 0.10.0
libtpu: 0.0.40
codegen_flags: <defaults>
</compile_context>

<pallas_src>
import jax
import jax.numpy as jnp
from jax.experimental import pallas as pl
from jax.experimental.pallas import tpu as pltpu


def _round_up(n, m):
    return ((n + m - 1) // m) * m


def _mlp_kernel(x_ref, w1_ref, b1_ref, w2_ref, b2_ref, o_ref):
    # x_ref : (TB, in_dim)   natural layout, batch on sublanes
    # w1_ref: (in_dim, H)    VMEM-resident (constant index map)
    # b1_ref: (1, H)
    # w2_ref: (H, L)
    # b2_ref: (1, L)
    # o_ref : (TB, L)        natural-layout output tile (contiguous HBM rows)
    x = x_ref[...]
    w1 = w1_ref[...]
    in_dim = x.shape[1]

    # Layer 1: K == in_dim (3) is too shallow for the MXU -> unrolled VPU
    # outer-product, bias folded into the accumulator init (broadcasts to
    # (TB, H) on the first add).
    acc = b1_ref[...]                                  # (1, H)
    for k in range(in_dim):                            # static, fully unrolled
        acc = acc + x[:, k:k + 1] * w1[k:k + 1, :]     # (TB,1)*(1,H) -> (TB,H)
    h = jnp.maximum(acc, 0.0)                          # ReLU, (TB, H)

    # Layer 2: 64x64 contraction on the MXU, f32 accumulation.
    out = jnp.dot(h, w2_ref[...], preferred_element_type=jnp.float32)
    out = out + b2_ref[...]                            # (TB, L) + (1, L)
    o_ref[...] = out.astype(o_ref.dtype)


def accelerometer_to_latent(x, w1, b1, w2, b2, *, tile_b=8192,
                            out_dtype=jnp.float32):
    """x: (B, input_dim) f32.  w1:(in,64), b1:(1,64), w2:(64,L), b2:(1,L).

    Returns (B, latent_dim) out_dtype, matching relu(x @ w1 + b1) @ w2 + b2.
    """
    B, in_dim = x.shape
    hidden = w1.shape[1]
    latent = w2.shape[1]

    tile_b = max(128, (int(tile_b) // 128) * 128)
    small_bp = _round_up(B, 8)
    if B < 256 and small_bp <= tile_b:
        # Small-B fast path: single grid step, minimal padding (multiple of 8
        # sublanes is enough since the last dims are full-extent blocks).
        tb = small_bp
    else:
        # Batch tile: multiple of 128, capped at tile_b.
        tb = min(tile_b, _round_up(B, 128))
        # v7x: guarantee >= 2 grid steps so ("parallel",) can use both
        # TensorCores.  No-op on v5e/v6e (single TC).
        tb = min(tb, _round_up((B + 1) // 2, 128))
        tb = max(128, tb)
    Bp = _round_up(B, tb)

    # Padded batch rows compute relu(b1)@W2+b2 (nonzero garbage) and are
    # sliced off below -- wasted work only, do NOT remove the [:B] slice.
    x_p = x if Bp == B else jnp.pad(x, ((0, Bp - B), (0, 0)))
    b1r = b1.reshape(1, hidden)
    b2r = b2.reshape(1, latent)

    grid = (Bp // tb,)
    out = pl.pallas_call(
        _mlp_kernel,
        out_shape=jax.ShapeDtypeStruct((Bp, latent), out_dtype),
        grid=grid,
        in_specs=[
            pl.BlockSpec((tb, in_dim), lambda i: (i, 0)),      # x tile (pipelined)
            pl.BlockSpec((in_dim, hidden), lambda i: (0, 0)),  # resident weights
            pl.BlockSpec((1, hidden), lambda i: (0, 0)),
            pl.BlockSpec((hidden, latent), lambda i: (0, 0)),
            pl.BlockSpec((1, latent), lambda i: (0, 0)),
        ],
        out_specs=pl.BlockSpec((tb, latent), lambda i: (i, 0)),
        compiler_params=pltpu.CompilerParams(
            dimension_semantics=("parallel",),       # both TCs on v7x
            vmem_limit_bytes=32 * 1024 * 1024,       # safe on v5e..v7x
        ),
    )(x_p, w1, b1r, w2, b2r)

    return out[:B]                    # (B, latent); no transpose, no extra pass


def init_params(key, input_dim=3, hidden_dim=64, latent_dim=64):
    """Deterministic synthetic parameters (torch.nn.Linear-like uniform init)."""
    k1, k2, k3, k4 = jax.random.split(key, 4)
    lim1 = 1.0 / jnp.sqrt(input_dim)
    lim2 = 1.0 / jnp.sqrt(hidden_dim)
    # Stored pre-transposed relative to torch: (out_f, in_f) -> (in_f, out_f).
    w1 = jax.random.uniform(k1, (input_dim, hidden_dim), jnp.float32, -lim1, lim1)
    b1 = jax.random.uniform(k2, (1, hidden_dim), jnp.float32, -lim1, lim1)
    w2 = jax.random.uniform(k3, (hidden_dim, latent_dim), jnp.float32, -lim2, lim2)
    b2 = jax.random.uniform(k4, (1, latent_dim), jnp.float32, -lim2, lim2)
    return w1, b1, w2, b2


if __name__ == "__main__":
    key = jax.random.PRNGKey(0)
    kx, kp = jax.random.split(key)

    B, input_dim, latent_dim = 8, 3, 64
    x = jax.random.normal(kx, (B, input_dim), jnp.float32)
    w1, b1, w2, b2 = init_params(kp, input_dim=input_dim, latent_dim=latent_dim)

    out = accelerometer_to_latent(x, w1, b1, w2, b2)
    out = jax.block_until_ready(out)

    ref = jnp.maximum(x @ w1 + b1, 0.0) @ w2 + b2
    assert out.shape == (B, latent_dim)
    assert jnp.allclose(out, ref, atol=1e-5, rtol=1e-5)

    # Exercise multi-tile + ragged-batch path (multiple grid steps, padding).
    B2 = 300
    x2 = jax.random.normal(kx, (B2, input_dim), jnp.float32)
    out2 = jax.block_until_ready(
        accelerometer_to_latent(x2, w1, b1, w2, b2, tile_b=128))
    ref2 = jnp.maximum(x2 @ w1 + b1, 0.0) @ w2 + b2
    assert out2.shape == (B2, latent_dim)
    assert jnp.allclose(out2, ref2, atol=1e-5, rtol=1e-5)

    # Exercise the >=2-grid-step clamp with the large default tile.
    B3 = 512
    x3 = jax.random.normal(kx, (B3, input_dim), jnp.float32)
    out3 = jax.block_until_ready(accelerometer_to_latent(x3, w1, b1, w2, b2))
    ref3 = jnp.maximum(x3 @ w1 + b1, 0.0) @ w2 + b2
    assert out3.shape == (B3, latent_dim)
    assert jnp.allclose(out3, ref3, atol=1e-5, rtol=1e-5)

    print("KERNEL_OK")
</pallas_src>

<mosaic_0001>
module attributes {stable_mosaic.version = 11 : i64} {
  func.func @_mlp_kernel(%arg0: i32, %arg1: memref<8x3xf32, #tpu.memory_space<vmem>>, %arg2: memref<3x64xf32, #tpu.memory_space<vmem>>, %arg3: memref<1x64xf32, #tpu.memory_space<vmem>>, %arg4: memref<64x64xf32, #tpu.memory_space<vmem>>, %arg5: memref<1x64xf32, #tpu.memory_space<vmem>>, %arg6: memref<8x64xf32, #tpu.memory_space<vmem>>) attributes {dimension_semantics = [#tpu.dimension_semantics<parallel>], iteration_bounds = array<i64: 1>, scalar_prefetch = 0 : i64, scratch_operands = 0 : i64, tpu.core_type = #tpu.core_type<tc>, window_params = [{transform_indices = @transform_0, window_bounds = array<i64: 8, 3>}, {pipeline_mode = #tpu.pipeline_mode<synchronous>, transform_indices = @transform_1, window_bounds = array<i64: 3, 64>}, {pipeline_mode = #tpu.pipeline_mode<synchronous>, transform_indices = @transform_2, window_bounds = array<i64: 1, 64>}, {pipeline_mode = #tpu.pipeline_mode<synchronous>, transform_indices = @transform_3, window_bounds = array<i64: 64, 64>}, {pipeline_mode = #tpu.pipeline_mode<synchronous>, transform_indices = @transform_4, window_bounds = array<i64: 1, 64>}, {transform_indices = @transform_5, window_bounds = array<i64: 8, 64>}]} {
    %c0 = arith.constant 0 : index
    %c0_0 = arith.constant 0 : index
    %0 = vector.load %arg1[%c0, %c0_0] : memref<8x3xf32, #tpu.memory_space<vmem>>, vector<8x3xf32>
    %c0_1 = arith.constant 0 : index
    %c0_2 = arith.constant 0 : index
    %1 = vector.load %arg2[%c0_1, %c0_2] : memref<3x64xf32, #tpu.memory_space<vmem>>, vector<3x64xf32>
    %c0_3 = arith.constant 0 : index
    %c0_4 = arith.constant 0 : index
    %2 = vector.load %arg3[%c0_3, %c0_4] : memref<1x64xf32, #tpu.memory_space<vmem>>, vector<1x64xf32>
    %3 = vector.extract_strided_slice %0 {offsets = [0, 0], sizes = [8, 1], strides = [1, 1]} : vector<8x3xf32> to vector<8x1xf32>
    %4 = vector.extract_strided_slice %1 {offsets = [0, 0], sizes = [1, 64], strides = [1, 1]} : vector<3x64xf32> to vector<1x64xf32>
    %5 = vector.broadcast %3 : vector<8x1xf32> to vector<8x64xf32>
    %6 = vector.broadcast %4 : vector<1x64xf32> to vector<8x64xf32>
    %7 = arith.mulf %5, %6 : vector<8x64xf32>
    %8 = vector.broadcast %2 : vector<1x64xf32> to vector<8x64xf32>
    %9 = arith.addf %8, %7 : vector<8x64xf32>
    %10 = vector.extract_strided_slice %0 {offsets = [0, 1], sizes = [8, 1], strides = [1, 1]} : vector<8x3xf32> to vector<8x1xf32>
    %11 = vector.extract_strided_slice %1 {offsets = [1, 0], sizes = [1, 64], strides = [1, 1]} : vector<3x64xf32> to vector<1x64xf32>
    %12 = vector.broadcast %10 : vector<8x1xf32> to vector<8x64xf32>
    %13 = vector.broadcast %11 : vector<1x64xf32> to vector<8x64xf32>
    %14 = arith.mulf %12, %13 : vector<8x64xf32>
    %15 = arith.addf %9, %14 : vector<8x64xf32>
    %16 = vector.extract_strided_slice %0 {offsets = [0, 2], sizes = [8, 1], strides = [1, 1]} : vector<8x3xf32> to vector<8x1xf32>
    %17 = vector.extract_strided_slice %1 {offsets = [2, 0], sizes = [1, 64], strides = [1, 1]} : vector<3x64xf32> to vector<1x64xf32>
    %18 = vector.broadcast %16 : vector<8x1xf32> to vector<8x64xf32>
    %19 = vector.broadcast %17 : vector<1x64xf32> to vector<8x64xf32>
    %20 = arith.mulf %18, %19 : vector<8x64xf32>
    %21 = arith.addf %15, %20 : vector<8x64xf32>
    %cst = arith.constant 0.000000e+00 : f32
    %22 = vector.broadcast %cst : f32 to vector<8x64xf32>
    %23 = arith.maximumf %21, %22 : vector<8x64xf32>
    %c0_5 = arith.constant 0 : index
    %c0_6 = arith.constant 0 : index
    %24 = vector.load %arg4[%c0_5, %c0_6] : memref<64x64xf32, #tpu.memory_space<vmem>>, vector<64x64xf32>
    %cst_7 = arith.constant dense<0.000000e+00> : vector<8x64xf32>
    %25 = tpu.matmul %23, %24, %cst_7 {dimension_numbers = #tpu.dot_dimension_numbers<[1], [0], [0], [1], [0, 0, 1, 1], [], []>} : vector<8x64xf32>, vector<64x64xf32>, vector<8x64xf32> -> vector<8x64xf32>
    %c0_8 = arith.constant 0 : index
    %c0_9 = arith.constant 0 : index
    %26 = vector.load %arg5[%c0_8, %c0_9] : memref<1x64xf32, #tpu.memory_space<vmem>>, vector<1x64xf32>
    %27 = vector.broadcast %26 : vector<1x64xf32> to vector<8x64xf32>
    %28 = arith.addf %25, %27 : vector<8x64xf32>
    %c0_10 = arith.constant 0 : index
    %c0_11 = arith.constant 0 : index
    %29 = vector.load %arg6[%c0_10, %c0_11] : memref<8x64xf32, #tpu.memory_space<vmem>>, vector<8x64xf32>
    tpu.vector_store %arg6[%c0_10, %c0_11], %28 {strides = array<i32>} : memref<8x64xf32, #tpu.memory_space<vmem>>, vector<8x64xf32>,
    return
  }
  func.func @transform_0(%arg0: i32) -> (i32, i32) {
    %c0_i32 = arith.constant 0 : i32
    %c0_i32_0 = arith.constant 0 : i32
    return %arg0, %c0_i32 : i32, i32
  }
  func.func @transform_1(%arg0: i32) -> (i32, i32) {
    %c0_i32 = arith.constant 0 : i32
    %c0_i32_0 = arith.constant 0 : i32
    %c0_i32_1 = arith.constant 0 : i32
    return %c0_i32, %c0_i32_0 : i32, i32
  }
  func.func @transform_2(%arg0: i32) -> (i32, i32) {
    %c0_i32 = arith.constant 0 : i32
    %c0_i32_0 = arith.constant 0 : i32
    %c0_i32_1 = arith.constant 0 : i32
    return %c0_i32, %c0_i32_0 : i32, i32
  }
  func.func @transform_3(%arg0: i32) -> (i32, i32) {
    %c0_i32 = arith.constant 0 : i32
    %c0_i32_0 = arith.constant 0 : i32
    %c0_i32_1 = arith.constant 0 : i32
    return %c0_i32, %c0_i32_0 : i32, i32
  }
  func.func @transform_4(%arg0: i32) -> (i32, i32) {
    %c0_i32 = arith.constant 0 : i32
    %c0_i32_0 = arith.constant 0 : i32
    %c0_i32_1 = arith.constant 0 : i32
    return %c0_i32, %c0_i32_0 : i32, i32
  }
  func.func @transform_5(%arg0: i32) -> (i32, i32) {
    %c0_i32 = arith.constant 0 : i32
    %c0_i32_0 = arith.constant 0 : i32
    return %arg0, %c0_i32 : i32, i32
  }
}

</mosaic_0001>

<bundles_post_ra>
// kernel: tpu_custom_call.1
= control target key start
LH: loop header
LB: loop body
LE: loop exit
PB: predicated region body
PF: predicated region fallthrough
CT: control target
= control target key end

     0   :  { %10 = vsyncpa [#allocation3], 0  ;;  %s362_s0 = inlined_call_operand.vmem [shape: f32[8,3], index: 0, kind: input, shape index: {}]   ;;  %s363_s1 = inlined_call_operand.vmem [shape: f32[3,64], index: 1, kind: input, shape index: {}]   ;;  %s364_s2 = inlined_call_operand.vmem [shape: f32[1,64], index: 2, kind: input, shape index: {}]   ;;  %s365_s3 = inlined_call_operand.hbm [shape: f32[64,64], index: 3, kind: input, shape index: {}]   ;;  %s366_s4 = inlined_call_operand.vmem [shape: f32[1,64], index: 4, kind: input, shape index: {}]   ;;  %s367_s5 = inlined_call_operand.hbm [shape: f32[8,64], index: 5, kind: output, shape index: {}]  }
   0x1   :  { %11 = vsyncpa [#allocation4], 0  ;;  %s286_s18 = smov [#allocation2]   ;;  %s238_s22 = scalar_lea.hbm %s365_s3, 1024 }
   0x2   :  { %s23_s19 = sshll.u32 %s286_s18, 4  ;;  %p239_p0 = scmp.ne.s32.totalorder %s365_s3, %s238_s22  ;;  %s24_s19 = int_to_ptr.vmem [resolvable:$true] %s23_s19 }
   0x3   :  { %p242_p1 = scmp.lt.u32.totalorder %s238_s22, %s365_s3 }
   0x5   :  { %p244_p2 = pnand %p242_p1, %p239_p0 }
   0x7   :  { %247 = shalt.err (!%p244_p2)
}
   0x8   :  { %s248_s27 = scalar_lea.vmem %s24_s19, 1024  ;;  %p253_p4 = scmp.lt.s32.totalorder %s24_s19, %s24_s19 }
   0x9   :  { %p249_p3 = scmp.ne.s32.totalorder %s24_s19, %s248_s27  ;;  %p254_p5 = scmp.lt.s32.totalorder %s248_s27, %s248_s27 }
   0xb   :  { %p255_p6 = por %p254_p5, %p253_p4 }
   0xd   :  { %p256_p7 = pnand %p255_p6, %p249_p3 }
   0xf   :  { %259 = shalt.err (!%p256_p7)
}
  0x10   :  { %s287_s28 = smov 128   ;;  %s288_s29 = smov 8  }
  0x11   :  { %29 = dma.hbm_to_vmem [thread:$0]  %s365_s3, 1024, %s24_s19, [#allocation3], %s287_s28, %s287_s28, %s288_s29  }
  0x12   :  { %282 = dma.done.wait [#allocation3], 1024  }
  0x13   :  { %283 = vsyncadd [#allocation3], 4294966272  ;;  %v289_v0 = vmov 0   ;;  %v290_v1 = vmov 2   ;;  %v291_v2 = vmov 0.0|0.0   ;;  %v35_v3 = vld [vmem:[%s362_s0] sm:$0xff]  ;;  %v43_v18 = vlaneseq }
  0x14   :  { %234 = vset.pattern.permute.xlu0 %v289_v0  ;;  %236 = vset.pattern.permute.xlu1 %v290_v1  ;;  %v76_v4 = vld [vmem:[#allocation2] sm:$0xff]  ;;  %v77_v5 = vld [vmem:[#allocation2 + $0x8] sm:$0xff]  ;;  %v78_v7 = vld [vmem:[#allocation2 + $0x10] sm:$0xff]  ;;  %v292_v12 = vmov 1   ;;  %vm293_vm0 = vmmov 0   ;;  %v294_v17 = vmov 0.0  }
  0x15   :  { %212 = vmatprep.subr.bf16.mxu0 %v291_v2  ;;  %40 = vperm.xlu0 %234, %v35_v3   ;;  %v213_v6 = vpack.c.bf16 %v77_v5, %v76_v4  ;;  %v79_v8 = vld [vmem:[#allocation2 + $0x18] sm:$0xff]  ;;  %v80_v10 = vld [vmem:[#allocation2 + $0x20] sm:$0xff]  ;;  %v81_v11 = vld [vmem:[#allocation2 + $0x28] sm:$0xff]  ;;  %v44_v19 = vshrl.u32 %v43_v18, 7  ;;  %vm91_vm1 = vcmask 523264   ;;  %s295_s12 = smov [#allocation5]  }
  0x16   :  { %66 = vperm.xlu1 %236, %v35_v3   ;;  %v216_v9 = vpack.c.bf16 %v79_v8, %v78_v7  ;;  %v219_v13 = vpack.c.bf16 %v81_v11, %v80_v10  ;;  %v82_v14 = vld [vmem:[#allocation2 + $0x30] sm:$0xff]  ;;  %v83_v15 = vld [vmem:[#allocation2 + $0x38] sm:$0xff]  ;;  %209 = vmatprep.mubr.msk.f32.mxu0 %vm293_vm0, %v294_v17  ;;  %v36_v21 = vld [vmem:[%s363_s1] sm:$0x7]  ;;  %s172_s13 = sshll.u32 %s295_s12, 4  ;;  %s173_s13 = int_to_ptr.vmem [resolvable:$true] %s172_s13 }
  0x17   :  { %214 = vmatpush3.bf16.msra.mxu0 %v213_v6  ;;  %v222_v16 = vpack.c.bf16 %v83_v15, %v82_v14  ;;  %v45_v20 = vsub.s32 0, %v44_v19  ;;  %v61_v23 = vsub.s32 1, %v44_v19  ;;  %v71_v24 = vsub.s32 2, %v44_v19  ;;  %v181_v29 = vld [vmem:[%s364_s2] ss:$0 sm:$0xff]  ;;  %s260_s2 = scalar_lea.vmem %s173_s13, 128  ;;  %p265_p9 = scmp.lt.s32.totalorder %s173_s13, %s173_s13 }
  0x18   :  { %215 = vmatprep.subr.bf16.mxu0 %v291_v2  ;;  %v182_v38 = vld [vmem:[%s366_s4] ss:$0 sm:$0xff]  ;;  %p261_p8 = scmp.ne.s32.totalorder %s173_s13, %s260_s2  ;;  %p266_p10 = scmp.lt.s32.totalorder %s260_s2, %s260_s2 }
  0x19   :  { %235 = vset.pattern.permute.xlu0 %v292_v12  ;;  %v46_v22 = vrot.slane %v36_v21, %v45_v20  ;;  %v62_v27 = vrot.slane %v36_v21, %v61_v23  ;;  %v72_v28 = vrot.slane %v36_v21, %v71_v24 }
  0x1a   :  { %56 = vperm.xlu0 %235, %v35_v3   ;;  %p267_p11 = por %p266_p10, %p265_p9 }
  0x1b   :  { %217 = vmatpush3.bf16.msra.mxu0 %v216_v9 }
  0x1c   :  { %218 = vmatprep.subr.bf16.mxu0 %v291_v2  ;;  %p268_p12 = pnand %p267_p11, %p261_p8 }
  0x1e   :  { %237 = vset.pattern.permute.xlu0 %v290_v1 }
  0x1f   :  { %220 = vmatpush3.bf16.msra.mxu0 %v219_v13 }
  0x20   :  { %221 = vmatprep.subr.bf16.mxu0 %v291_v2 }
  0x23   :  { %223 = vmatpush3.bf16.msra.mxu0 %v222_v16 }
  0x94   :  { %v41_v25 = vpop.permute.xlu0 %40 }
  0x95   :  { %v47_v26 = vmul.f32 %v46_v22, %v41_v25  ;;  %v67_v30 = vpop.permute.xlu1 %66 }
  0x96   :  { %v73_v34 = vmul.f32 %v72_v28, %v67_v30 }
  0x97   :  { %v54_v32 = vadd.f32 %v181_v29, %v47_v26 }
  0x99   :  { %v57_v31 = vpop.permute.xlu0 %56 }
  0x9a   :  { %v63_v33 = vmul.f32 %v62_v27, %v57_v31 }
  0x9c   :  { %v64_v35 = vadd.f32 %v63_v33, %v54_v32 }
  0x9e   :  { %v74_v36 = vadd.f32 %v73_v34, %v64_v35 }
  0xa0   :  { %v75_v37 = vmax.f32 %v74_v36, 0.0 }
  0xa2   :  { %210 = vmatmul.mubr.msk.f32.vlgmr.msra.gmra.mrb[0].mxu0 %vm91_vm1, %v75_v37 }
 0x175   :  { %v161_v39 = vpop.f32.mrb[0].mxu0 }
 0x176   :  { %v162_v40 = vadd.f32 %v182_v38, %v161_v39  ;;  %v211_v41 = vpop.f32.mrb[1].mxu0 }
 0x178   :  { %165 = vst.msk [vmem:[#allocation5] sm:$0xff] %vm91_vm1, %v162_v40 }
 0x179   :  { %271 = shalt.err (!%p268_p12)
}
 0x17a   :  { %s272_s16 = scalar_lea.hbm %s367_s5, 128 }
 0x17b   :  { %p273_p13 = scmp.ne.s32.totalorder %s367_s5, %s272_s16  ;;  %p276_p0 = scmp.lt.u32.totalorder %s272_s16, %s367_s5 }
 0x17d   :  { %p278_p1 = pnand %p276_p0, %p273_p13 }
 0x17f   :  { %281 = shalt.err (!%p278_p1)
}
 0x180   :  { %175 = dma.vmem_to_hbm [thread:$0]  %s173_s13, 128, %s367_s5, [#allocation4]  }
 0x181   :  { %284 = dma.done.wait [#allocation4], 128  }
 0x182   :  { %285 = vsyncadd [#allocation4], 4294967168 }
 0x183   :  { %179 = vsyncpa [#allocation3], 1 }
 0x184   :  { %180 = vsyncpa [#allocation4], 1 }

</bundles_post_ra>
